<compile_context>
chip_gen: v5e
topology: v5e:2x2
jax: 0.10.0
libtpu: 0.0.40
codegen_flags: <defaults>
</compile_context>

<pallas_src>
import jax
import jax.numpy as jnp
from jax.experimental import pallas as pl
from jax.experimental.pallas import tpu as pltpu

NEG_SLOPE = 0.2  # LeakyReLU(0.2)


def _lrelu(x):
    # single VPU max instead of compare+select
    return jnp.maximum(x, NEG_SLOPE * x)


def disnet_kernel(x_ref,
                  ew1, eb1, ew2, eb2, ew3, eb3,
                  qw, qb,
                  dw1, db1, dw2, db2, dw3, db3,
                  out_ref):
    TB, N, A = x_ref.shape
    dim = ew3.shape[-1]
    M = TB * N
    L = out_ref.shape[-1]

    x2 = x_ref[...].reshape(M, A)                       # f32 (M, A)

    def lin(v, w_ref, b_ref):
        # bf16 MXU operands, f32 accumulate, f32 bias add.
        return (jnp.dot(v.astype(jnp.bfloat16), w_ref[...],
                        preferred_element_type=jnp.float32) + b_ref[...])

    # ---- encoder: Linear -> LeakyReLU -> Linear -> LeakyReLU -> Linear ----
    h = _lrelu(lin(x2, ew1, eb1))
    h = _lrelu(lin(h, ew2, eb2))
    h = lin(h, ew3, eb3)                                # (M, dim)

    # ---- fused qkv: one (M, 6*dim) matmul; output lane layout (from the
    # PyTorch reshape(B, N, 3, H, C)) is [q_h0 | q_h1 | k_h0 | k_h1 | v_h0 | v_h1]
    qkv = lin(h, qw, qb)                                # (M, 6*dim) f32

    def chunk(j):                                       # static 32-lane slice
        return qkv[:, j * dim:(j + 1) * dim]            # (M, dim)

    def stack_heads(a, b):                              # heads -> batch axis
        return jnp.concatenate([a, b], axis=0).reshape(2 * TB, N, dim)

    q = stack_heads(chunk(0), chunk(1))
    k = stack_heads(chunk(2), chunk(3))
    v = stack_heads(chunk(4), chunk(5))

    # ---- both heads' attention in one batched einsum pair (batch = 2*TB) ----
    scale = dim ** (-0.5)
    s = jnp.einsum('bnc,bmc->bnm',
                   q.astype(jnp.bfloat16), k.astype(jnp.bfloat16),
                   preferred_element_type=jnp.float32) * scale
    m = jnp.max(s, axis=-1, keepdims=True)
    e = jnp.exp(s - m)
    p = e * pl.reciprocal(jnp.sum(e, axis=-1, keepdims=True), approx=True)
    z = jnp.einsum('bnm,bmc->bnc',
                   p.astype(jnp.bfloat16), v.astype(jnp.bfloat16),
                   preferred_element_type=jnp.float32)  # (2*TB, N, dim)

    # ---- decoder: single shared-weight pass over both heads (2*M rows) ----
    zz = z.reshape(2 * M, dim)
    d = _lrelu(lin(zz, dw1, db1))
    d = _lrelu(lin(d, dw2, db2))
    o = lin(d, dw3, db3)                                # (2*M, A)
    o1 = o[:M]                                          # head-0 reconstruction
    o2 = o[M:]                                          # head-1 reconstruction

    # ---- eval branch: per-sample anomaly score, summed over (N, att_dim) ----
    err = (x2 - o1) ** 2 + (x2 - o2) ** 2               # (M, A) f32
    row_err = jnp.sum(err.reshape(TB, N, A), axis=2)    # (TB, N)
    # (1, TB) per-sample sums via a contraction (keeps the sample axis in
    # lanes without an explicit transpose).
    scores = jax.lax.dot_general(
        jnp.ones((1, N), jnp.float32), row_err,
        dimension_numbers=(((1,), (1,)), ((), ())),
        preferred_element_type=jnp.float32)              # (1, TB)

    if TB == L:
        out_ref[0] = scores                              # lane-dense, unmasked
    else:
        # ragged tail: pad to the lane-dense row width
        out_ref[0] = jnp.concatenate(
            [scores, jnp.zeros((1, L - TB), jnp.float32)], axis=1)


def disnet_anomaly_score(x, params, dim, *, block_b=128):
    """Eval-mode DisNet forward: per-sample anomaly scores, shape (B,)."""
    B, N, A = x.shape
    TB = max(1, min(block_b, B))
    G = pl.cdiv(B, TB)
    B_pad = G * TB
    if B_pad != B:
        # TODO(synk): prefer block_b dividing B; this is one extra HBM copy of
        # x plus wasted compute on up to TB-1 dead (zero) samples.
        x = jnp.concatenate(
            [x, jnp.zeros((B_pad - B, N, A), x.dtype)], axis=0)

    # lane-dense score row per grid step
    L = max(128, ((TB + 127) // 128) * 128)

    num_heads = params["qkv_w"].shape[1] // (3 * dim)
    assert num_heads == 2 and params["qkv_w"].shape[1] == 3 * num_heads * dim

    bf16 = jnp.bfloat16
    operands = [params["enc_w1"].astype(bf16), params["enc_b1"],
                params["enc_w2"].astype(bf16), params["enc_b2"],
                params["enc_w3"].astype(bf16), params["enc_b3"],
                params["qkv_w"].astype(bf16), params["qkv_b"],
                params["dec_w1"].astype(bf16), params["dec_b1"],
                params["dec_w2"].astype(bf16), params["dec_b2"],
                params["dec_w3"].astype(bf16), params["dec_b3"]]

    def full_spec(arr):
        # Constant block index -> DMA'd once, kept resident across the grid.
        zeros = (0,) * arr.ndim
        return pl.BlockSpec(arr.shape, lambda b, _z=zeros: _z)

    in_specs = ([pl.BlockSpec((TB, N, A), lambda b: (b, 0, 0))]
                + [full_spec(a) for a in operands])

    out = pl.pallas_call(
        disnet_kernel,
        out_shape=jax.ShapeDtypeStruct((G, 1, L), jnp.float32),
        grid_spec=pltpu.PrefetchScalarGridSpec(
            num_scalar_prefetch=0,
            grid=(G,),
            in_specs=in_specs,
            out_specs=pl.BlockSpec((1, 1, L), lambda b: (b, 0, 0)),
        ),
        compiler_params=pltpu.CompilerParams(
            dimension_semantics=("parallel",)),
    )(x, *operands)

    return out[:, 0, :TB].reshape(-1)[:B]


def init_params(key, dim, att_dim, num_heads=2):
    # Same parameter shapes as the PyTorch module (Linear weights transposed
    # to (in, out); biases kept as (1, out) for 2-D VMEM tiles).
    shapes = {
        "enc_w1": (att_dim, 2 * dim), "enc_b1": (1, 2 * dim),
        "enc_w2": (2 * dim, 2 * dim), "enc_b2": (1, 2 * dim),
        "enc_w3": (2 * dim, dim),     "enc_b3": (1, dim),
        "qkv_w": (dim, 3 * num_heads * dim), "qkv_b": (1, 3 * num_heads * dim),
        "dec_w1": (dim, 2 * dim),     "dec_b1": (1, 2 * dim),
        "dec_w2": (2 * dim, 2 * dim), "dec_b2": (1, 2 * dim),
        "dec_w3": (2 * dim, att_dim), "dec_b3": (1, att_dim),
    }
    keys = jax.random.split(key, len(shapes))
    return {name: 0.1 * jax.random.normal(k, shp, jnp.float32)
            for k, (name, shp) in zip(keys, shapes.items())}


def disnet_reference(x, p, dim):
    """Pure-JAX f32 reference of the eval-mode forward (for verification)."""
    def lin(v, w, b):
        return jnp.dot(v, w, preferred_element_type=jnp.float32) + b[0]

    h = _lrelu(lin(x, p["enc_w1"], p["enc_b1"]))
    h = _lrelu(lin(h, p["enc_w2"], p["enc_b2"]))
    h = lin(h, p["enc_w3"], p["enc_b3"])               # (B, N, dim)
    B, N, C = h.shape
    qkv = lin(h, p["qkv_w"], p["qkv_b"]).reshape(B, N, 3, 2, C)
    qkv = jnp.transpose(qkv, (2, 0, 3, 1, 4))          # (3, B, 2, N, C)
    q, k, v = qkv[0], qkv[1], qkv[2]
    attn = jnp.einsum("bhnc,bhmc->bhnm", q, k) * (C ** -0.5)
    attn = jax.nn.softmax(attn, axis=-1)
    z = jnp.einsum("bhnm,bhmc->bhnc", attn, v)         # (B, 2, N, C)

    def decoder(zz):
        d = _lrelu(lin(zz, p["dec_w1"], p["dec_b1"]))
        d = _lrelu(lin(d, p["dec_w2"], p["dec_b2"]))
        return lin(d, p["dec_w3"], p["dec_b3"])

    o1 = decoder(z[:, 0])
    o2 = decoder(z[:, 1])
    return jnp.sum((x - o1) ** 2 + (x - o2) ** 2, axis=(1, 2))


if __name__ == "__main__":
    dim, att_dim, num_heads = 32, 32, 2
    key = jax.random.PRNGKey(0)
    k_x, k_p, k_x2 = jax.random.split(key, 3)
    params = init_params(k_p, dim, att_dim, num_heads)

    # Case 1: small batch, single grid step (TB = B = 2).
    B, N = 2, 8
    x = jax.random.normal(k_x, (B, N, att_dim), jnp.float32)
    score = jax.block_until_ready(disnet_anomaly_score(x, params, dim))
    ref = jax.block_until_ready(disnet_reference(x, params, dim))
    rel_err = jnp.max(jnp.abs(score - ref) / (jnp.abs(ref) + 1e-6))
    assert score.shape == (B,)
    assert float(rel_err) < 2e-2, f"mismatch vs reference, rel_err={rel_err}"

    # Case 2: multi-step grid with a ragged tail (B=3, TB=2 -> G=2).
    B2 = 3
    x2 = jax.random.normal(k_x2, (B2, N, att_dim), jnp.float32)
    score2 = jax.block_until_ready(
        disnet_anomaly_score(x2, params, dim, block_b=2))
    ref2 = jax.block_until_ready(disnet_reference(x2, params, dim))
    rel_err2 = jnp.max(jnp.abs(score2 - ref2) / (jnp.abs(ref2) + 1e-6))
    assert score2.shape == (B2,)
    assert float(rel_err2) < 2e-2, f"mismatch vs reference, rel_err={rel_err2}"

    print("KERNEL_OK")
</pallas_src>

<mosaic_0001>
module attributes {stable_mosaic.version = 11 : i64} {
  func.func @disnet_kernel(%arg0: i32, %arg1: memref<2x8x32xf32, #tpu.memory_space<vmem>>, %arg2: memref<32x64xbf16, #tpu.memory_space<vmem>>, %arg3: memref<1x64xf32, #tpu.memory_space<vmem>>, %arg4: memref<64x64xbf16, #tpu.memory_space<vmem>>, %arg5: memref<1x64xf32, #tpu.memory_space<vmem>>, %arg6: memref<64x32xbf16, #tpu.memory_space<vmem>>, %arg7: memref<1x32xf32, #tpu.memory_space<vmem>>, %arg8: memref<32x192xbf16, #tpu.memory_space<vmem>>, %arg9: memref<1x192xf32, #tpu.memory_space<vmem>>, %arg10: memref<32x64xbf16, #tpu.memory_space<vmem>>, %arg11: memref<1x64xf32, #tpu.memory_space<vmem>>, %arg12: memref<64x64xbf16, #tpu.memory_space<vmem>>, %arg13: memref<1x64xf32, #tpu.memory_space<vmem>>, %arg14: memref<64x32xbf16, #tpu.memory_space<vmem>>, %arg15: memref<1x32xf32, #tpu.memory_space<vmem>>, %arg16: memref<1x1x128xf32, #tpu.memory_space<vmem>>) attributes {dimension_semantics = [#tpu.dimension_semantics<parallel>], iteration_bounds = array<i64: 1>, scalar_prefetch = 0 : i64, scratch_operands = 0 : i64, tpu.core_type = #tpu.core_type<tc>, window_params = [{transform_indices = @transform_0, window_bounds = array<i64: 2, 8, 32>}, {pipeline_mode = #tpu.pipeline_mode<synchronous>, transform_indices = @transform_1, window_bounds = array<i64: 32, 64>}, {pipeline_mode = #tpu.pipeline_mode<synchronous>, transform_indices = @transform_2, window_bounds = array<i64: 1, 64>}, {pipeline_mode = #tpu.pipeline_mode<synchronous>, transform_indices = @transform_3, window_bounds = array<i64: 64, 64>}, {pipeline_mode = #tpu.pipeline_mode<synchronous>, transform_indices = @transform_4, window_bounds = array<i64: 1, 64>}, {pipeline_mode = #tpu.pipeline_mode<synchronous>, transform_indices = @transform_5, window_bounds = array<i64: 64, 32>}, {pipeline_mode = #tpu.pipeline_mode<synchronous>, transform_indices = @transform_6, window_bounds = array<i64: 1, 32>}, {pipeline_mode = #tpu.pipeline_mode<synchronous>, transform_indices = @transform_7, window_bounds = array<i64: 32, 192>}, {pipeline_mode = #tpu.pipeline_mode<synchronous>, transform_indices = @transform_8, window_bounds = array<i64: 1, 192>}, {pipeline_mode = #tpu.pipeline_mode<synchronous>, transform_indices = @transform_9, window_bounds = array<i64: 32, 64>}, {pipeline_mode = #tpu.pipeline_mode<synchronous>, transform_indices = @transform_10, window_bounds = array<i64: 1, 64>}, {pipeline_mode = #tpu.pipeline_mode<synchronous>, transform_indices = @transform_11, window_bounds = array<i64: 64, 64>}, {pipeline_mode = #tpu.pipeline_mode<synchronous>, transform_indices = @transform_12, window_bounds = array<i64: 1, 64>}, {pipeline_mode = #tpu.pipeline_mode<synchronous>, transform_indices = @transform_13, window_bounds = array<i64: 64, 32>}, {pipeline_mode = #tpu.pipeline_mode<synchronous>, transform_indices = @transform_14, window_bounds = array<i64: 1, 32>}, {transform_indices = @transform_15, window_bounds = array<i64: 1, 1, 128>}]} {
    %c0 = arith.constant 0 : index
    %c0_0 = arith.constant 0 : index
    %c0_1 = arith.constant 0 : index
    %0 = vector.load %arg1[%c0, %c0_0, %c0_1] : memref<2x8x32xf32, #tpu.memory_space<vmem>>, vector<2x8x32xf32>
    %1 = vector.shape_cast %0 : vector<2x8x32xf32> to vector<16x32xf32>
    %2 = arith.truncf %1 : vector<16x32xf32> to vector<16x32xbf16>
    %c0_2 = arith.constant 0 : index
    %c0_3 = arith.constant 0 : index
    %3 = vector.load %arg2[%c0_2, %c0_3] : memref<32x64xbf16, #tpu.memory_space<vmem>>, vector<32x64xbf16>
    %cst = arith.constant dense<0.000000e+00> : vector<16x64xf32>
    %4 = tpu.matmul %2, %3, %cst {dimension_numbers = #tpu.dot_dimension_numbers<[1], [0], [0], [1], [0, 0, 1, 1], [], []>} : vector<16x32xbf16>, vector<32x64xbf16>, vector<16x64xf32> -> vector<16x64xf32>
    %c0_4 = arith.constant 0 : index
    %c0_5 = arith.constant 0 : index
    %5 = vector.load %arg3[%c0_4, %c0_5] : memref<1x64xf32, #tpu.memory_space<vmem>>, vector<1x64xf32>
    %6 = vector.broadcast %5 : vector<1x64xf32> to vector<16x64xf32>
    %7 = arith.addf %4, %6 : vector<16x64xf32>
    %cst_6 = arith.constant 2.000000e-01 : f32
    %8 = vector.broadcast %cst_6 : f32 to vector<16x64xf32>
    %9 = arith.mulf %8, %7 : vector<16x64xf32>
    %10 = arith.maximumf %7, %9 : vector<16x64xf32>
    %11 = arith.truncf %10 : vector<16x64xf32> to vector<16x64xbf16>
    %c0_7 = arith.constant 0 : index
    %c0_8 = arith.constant 0 : index
    %12 = vector.load %arg4[%c0_7, %c0_8] : memref<64x64xbf16, #tpu.memory_space<vmem>>, vector<64x64xbf16>
    %cst_9 = arith.constant dense<0.000000e+00> : vector<16x64xf32>
    %13 = tpu.matmul %11, %12, %cst_9 {dimension_numbers = #tpu.dot_dimension_numbers<[1], [0], [0], [1], [0, 0, 1, 1], [], []>} : vector<16x64xbf16>, vector<64x64xbf16>, vector<16x64xf32> -> vector<16x64xf32>
    %c0_10 = arith.constant 0 : index
    %c0_11 = arith.constant 0 : index
    %14 = vector.load %arg5[%c0_10, %c0_11] : memref<1x64xf32, #tpu.memory_space<vmem>>, vector<1x64xf32>
    %15 = vector.broadcast %14 : vector<1x64xf32> to vector<16x64xf32>
    %16 = arith.addf %13, %15 : vector<16x64xf32>
    %cst_12 = arith.constant 2.000000e-01 : f32
    %17 = vector.broadcast %cst_12 : f32 to vector<16x64xf32>
    %18 = arith.mulf %17, %16 : vector<16x64xf32>
    %19 = arith.maximumf %16, %18 : vector<16x64xf32>
    %20 = arith.truncf %19 : vector<16x64xf32> to vector<16x64xbf16>
    %c0_13 = arith.constant 0 : index
    %c0_14 = arith.constant 0 : index
    %21 = vector.load %arg6[%c0_13, %c0_14] : memref<64x32xbf16, #tpu.memory_space<vmem>>, vector<64x32xbf16>
    %cst_15 = arith.constant dense<0.000000e+00> : vector<16x32xf32>
    %22 = tpu.matmul %20, %21, %cst_15 {dimension_numbers = #tpu.dot_dimension_numbers<[1], [0], [0], [1], [0, 0, 1, 1], [], []>} : vector<16x64xbf16>, vector<64x32xbf16>, vector<16x32xf32> -> vector<16x32xf32>
    %c0_16 = arith.constant 0 : index
    %c0_17 = arith.constant 0 : index
    %23 = vector.load %arg7[%c0_16, %c0_17] : memref<1x32xf32, #tpu.memory_space<vmem>>, vector<1x32xf32>
    %24 = vector.broadcast %23 : vector<1x32xf32> to vector<16x32xf32>
    %25 = arith.addf %22, %24 : vector<16x32xf32>
    %26 = arith.truncf %25 : vector<16x32xf32> to vector<16x32xbf16>
    %c0_18 = arith.constant 0 : index
    %c0_19 = arith.constant 0 : index
    %27 = vector.load %arg8[%c0_18, %c0_19] : memref<32x192xbf16, #tpu.memory_space<vmem>>, vector<32x192xbf16>
    %cst_20 = arith.constant dense<0.000000e+00> : vector<16x192xf32>
    %28 = tpu.matmul %26, %27, %cst_20 {dimension_numbers = #tpu.dot_dimension_numbers<[1], [0], [0], [1], [0, 0, 1, 1], [], []>} : vector<16x32xbf16>, vector<32x192xbf16>, vector<16x192xf32> -> vector<16x192xf32>
    %c0_21 = arith.constant 0 : index
    %c0_22 = arith.constant 0 : index
    %29 = vector.load %arg9[%c0_21, %c0_22] : memref<1x192xf32, #tpu.memory_space<vmem>>, vector<1x192xf32>
    %30 = vector.broadcast %29 : vector<1x192xf32> to vector<16x192xf32>
    %31 = arith.addf %28, %30 : vector<16x192xf32>
    %32 = vector.extract_strided_slice %31 {offsets = [0, 0], sizes = [16, 32], strides = [1, 1]} : vector<16x192xf32> to vector<16x32xf32>
    %33 = vector.extract_strided_slice %31 {offsets = [0, 32], sizes = [16, 32], strides = [1, 1]} : vector<16x192xf32> to vector<16x32xf32>
    %34 = tpu.concatenate %32, %33 in 0 : vector<16x32xf32>, vector<16x32xf32> -> vector<32x32xf32>
    %35 = vector.shape_cast %34 : vector<32x32xf32> to vector<4x8x32xf32>
    %36 = vector.extract_strided_slice %31 {offsets = [0, 64], sizes = [16, 32], strides = [1, 1]} : vector<16x192xf32> to vector<16x32xf32>
    %37 = vector.extract_strided_slice %31 {offsets = [0, 96], sizes = [16, 32], strides = [1, 1]} : vector<16x192xf32> to vector<16x32xf32>
    %38 = tpu.concatenate %36, %37 in 0 : vector<16x32xf32>, vector<16x32xf32> -> vector<32x32xf32>
    %39 = vector.shape_cast %38 : vector<32x32xf32> to vector<4x8x32xf32>
    %40 = vector.extract_strided_slice %31 {offsets = [0, 128], sizes = [16, 32], strides = [1, 1]} : vector<16x192xf32> to vector<16x32xf32>
    %41 = vector.extract_strided_slice %31 {offsets = [0, 160], sizes = [16, 32], strides = [1, 1]} : vector<16x192xf32> to vector<16x32xf32>
    %42 = tpu.concatenate %40, %41 in 0 : vector<16x32xf32>, vector<16x32xf32> -> vector<32x32xf32>
    %43 = vector.shape_cast %42 : vector<32x32xf32> to vector<4x8x32xf32>
    %44 = arith.truncf %35 : vector<4x8x32xf32> to vector<4x8x32xbf16>
    %45 = arith.truncf %39 : vector<4x8x32xf32> to vector<4x8x32xbf16>
    "tpu.trace_start"() <{level = 10 : i32, message = "bnc,bmc->bnm"}> : () -> ()
    %cst_23 = arith.constant dense<0.000000e+00> : vector<4x8x8xf32>
    %46 = tpu.matmul %44, %45, %cst_23 {dimension_numbers = #tpu.dot_dimension_numbers<[2], [2], [1], [1], [0, 0, 0, 1, 1, 1], [0], [0]>} : vector<4x8x32xbf16>, vector<4x8x32xbf16>, vector<4x8x8xf32> -> vector<4x8x8xf32>
    "tpu.trace_stop"() : () -> ()
    %cst_24 = arith.constant 0.176776692 : f32
    %47 = vector.broadcast %cst_24 : f32 to vector<4x8x8xf32>
    %48 = arith.mulf %46, %47 : vector<4x8x8xf32>
    %cst_25 = arith.constant dense<0xFF800000> : vector<4x8xf32>
    %49 = vector.multi_reduction <maximumf>, %48, %cst_25 [2] : vector<4x8x8xf32> to vector<4x8xf32>
    %50 = vector.shape_cast %49 : vector<4x8xf32> to vector<4x8x1xf32>
    %51 = vector.broadcast %50 : vector<4x8x1xf32> to vector<4x8x8xf32>
    %52 = arith.subf %48, %51 : vector<4x8x8xf32>
    %53 = math.exp %52 : vector<4x8x8xf32>
    %cst_26 = arith.constant dense<0.000000e+00> : vector<4x8xf32>
    %54 = vector.multi_reduction <add>, %53, %cst_26 [2] : vector<4x8x8xf32> to vector<4x8xf32>
    %55 = vector.shape_cast %54 : vector<4x8xf32> to vector<4x8x1xf32>
    %56 = tpu.reciprocal %55 {approx = true} : vector<4x8x1xf32> -> vector<4x8x1xf32>
    %57 = vector.broadcast %56 : vector<4x8x1xf32> to vector<4x8x8xf32>
    %58 = arith.mulf %53, %57 : vector<4x8x8xf32>
    %59 = arith.truncf %58 : vector<4x8x8xf32> to vector<4x8x8xbf16>
    %60 = arith.truncf %43 : vector<4x8x32xf32> to vector<4x8x32xbf16>
    "tpu.trace_start"() <{level = 10 : i32, message = "bnm,bmc->bnc"}> : () -> ()
    %cst_27 = arith.constant dense<0.000000e+00> : vector<4x8x32xf32>
    %61 = tpu.matmul %59, %60, %cst_27 {dimension_numbers = #tpu.dot_dimension_numbers<[2], [1], [1], [2], [0, 0, 0, 1, 1, 2], [0], [0]>} : vector<4x8x8xbf16>, vector<4x8x32xbf16>, vector<4x8x32xf32> -> vector<4x8x32xf32>
    "tpu.trace_stop"() : () -> ()
    %62 = vector.shape_cast %61 : vector<4x8x32xf32> to vector<32x32xf32>
    %63 = arith.truncf %62 : vector<32x32xf32> to vector<32x32xbf16>
    %c0_28 = arith.constant 0 : index
    %c0_29 = arith.constant 0 : index
    %64 = vector.load %arg10[%c0_28, %c0_29] : memref<32x64xbf16, #tpu.memory_space<vmem>>, vector<32x64xbf16>
    %cst_30 = arith.constant dense<0.000000e+00> : vector<32x64xf32>
    %65 = tpu.matmul %63, %64, %cst_30 {dimension_numbers = #tpu.dot_dimension_numbers<[1], [0], [0], [1], [0, 0, 1, 1], [], []>} : vector<32x32xbf16>, vector<32x64xbf16>, vector<32x64xf32> -> vector<32x64xf32>
    %c0_31 = arith.constant 0 : index
    %c0_32 = arith.constant 0 : index
    %66 = vector.load %arg11[%c0_31, %c0_32] : memref<1x64xf32, #tpu.memory_space<vmem>>, vector<1x64xf32>
    %67 = vector.broadcast %66 : vector<1x64xf32> to vector<32x64xf32>
    %68 = arith.addf %65, %67 : vector<32x64xf32>
    %cst_33 = arith.constant 2.000000e-01 : f32
    %69 = vector.broadcast %cst_33 : f32 to vector<32x64xf32>
    %70 = arith.mulf %69, %68 : vector<32x64xf32>
    %71 = arith.maximumf %68, %70 : vector<32x64xf32>
    %72 = arith.truncf %71 : vector<32x64xf32> to vector<32x64xbf16>
    %c0_34 = arith.constant 0 : index
    %c0_35 = arith.constant 0 : index
    %73 = vector.load %arg12[%c0_34, %c0_35] : memref<64x64xbf16, #tpu.memory_space<vmem>>, vector<64x64xbf16>
    %cst_36 = arith.constant dense<0.000000e+00> : vector<32x64xf32>
    %74 = tpu.matmul %72, %73, %cst_36 {dimension_numbers = #tpu.dot_dimension_numbers<[1], [0], [0], [1], [0, 0, 1, 1], [], []>} : vector<32x64xbf16>, vector<64x64xbf16>, vector<32x64xf32> -> vector<32x64xf32>
    %c0_37 = arith.constant 0 : index
    %c0_38 = arith.constant 0 : index
    %75 = vector.load %arg13[%c0_37, %c0_38] : memref<1x64xf32, #tpu.memory_space<vmem>>, vector<1x64xf32>
    %76 = vector.broadcast %75 : vector<1x64xf32> to vector<32x64xf32>
    %77 = arith.addf %74, %76 : vector<32x64xf32>
    %cst_39 = arith.constant 2.000000e-01 : f32
    %78 = vector.broadcast %cst_39 : f32 to vector<32x64xf32>
    %79 = arith.mulf %78, %77 : vector<32x64xf32>
    %80 = arith.maximumf %77, %79 : vector<32x64xf32>
    %81 = arith.truncf %80 : vector<32x64xf32> to vector<32x64xbf16>
    %c0_40 = arith.constant 0 : index
    %c0_41 = arith.constant 0 : index
    %82 = vector.load %arg14[%c0_40, %c0_41] : memref<64x32xbf16, #tpu.memory_space<vmem>>, vector<64x32xbf16>
    %cst_42 = arith.constant dense<0.000000e+00> : vector<32x32xf32>
    %83 = tpu.matmul %81, %82, %cst_42 {dimension_numbers = #tpu.dot_dimension_numbers<[1], [0], [0], [1], [0, 0, 1, 1], [], []>} : vector<32x64xbf16>, vector<64x32xbf16>, vector<32x32xf32> -> vector<32x32xf32>
    %c0_43 = arith.constant 0 : index
    %c0_44 = arith.constant 0 : index
    %84 = vector.load %arg15[%c0_43, %c0_44] : memref<1x32xf32, #tpu.memory_space<vmem>>, vector<1x32xf32>
    %85 = vector.broadcast %84 : vector<1x32xf32> to vector<32x32xf32>
    %86 = arith.addf %83, %85 : vector<32x32xf32>
    %87 = vector.extract_strided_slice %86 {offsets = [0, 0], sizes = [16, 32], strides = [1, 1]} : vector<32x32xf32> to vector<16x32xf32>
    %88 = vector.extract_strided_slice %86 {offsets = [16, 0], sizes = [16, 32], strides = [1, 1]} : vector<32x32xf32> to vector<16x32xf32>
    %89 = arith.subf %1, %87 : vector<16x32xf32>
    %90 = arith.mulf %89, %89 : vector<16x32xf32>
    %91 = arith.subf %1, %88 : vector<16x32xf32>
    %92 = arith.mulf %91, %91 : vector<16x32xf32>
    %93 = arith.addf %90, %92 : vector<16x32xf32>
    %94 = vector.shape_cast %93 : vector<16x32xf32> to vector<2x8x32xf32>
    %cst_45 = arith.constant dense<0.000000e+00> : vector<2x8xf32>
    %95 = vector.multi_reduction <add>, %94, %cst_45 [2] : vector<2x8x32xf32> to vector<2x8xf32>
    %cst_46 = arith.constant 1.000000e+00 : f32
    %96 = vector.broadcast %cst_46 : f32 to vector<1x8xf32>
    %cst_47 = arith.constant dense<0.000000e+00> : vector<1x2xf32>
    %97 = tpu.matmul %96, %95, %cst_47 {dimension_numbers = #tpu.dot_dimension_numbers<[1], [1], [0], [0], [0, 0, 1, 0], [], []>} : vector<1x8xf32>, vector<2x8xf32>, vector<1x2xf32> -> vector<1x2xf32>
    %cst_48 = arith.constant 0.000000e+00 : f32
    %98 = vector.broadcast %cst_48 : f32 to vector<1x126xf32>
    %99 = tpu.concatenate %97, %98 in 1 : vector<1x2xf32>, vector<1x126xf32> -> vector<1x128xf32>
    %c0_49 = arith.constant 0 : index
    %c0_50 = arith.constant 0 : index
    %c0_51 = arith.constant 0 : index
    %100 = vector.load %arg16[%c0_49, %c0_50, %c0_51] : memref<1x1x128xf32, #tpu.memory_space<vmem>>, vector<1x1x128xf32>
    %101 = vector.shape_cast %100 : vector<1x1x128xf32> to vector<1x128xf32>
    %102 = vector.shape_cast %99 : vector<1x128xf32> to vector<1x1x128xf32>
    tpu.vector_store %arg16[%c0_49, %c0_50, %c0_51], %102 {strides = array<i32>} : memref<1x1x128xf32, #tpu.memory_space<vmem>>, vector<1x1x128xf32>,
    return
  }
  func.func @transform_0(%arg0: i32) -> (i32, i32, i32) {
    %c0_i32 = arith.constant 0 : i32
    %c0_i32_0 = arith.constant 0 : i32
    %c0_i32_1 = arith.constant 0 : i32
    return %arg0, %c0_i32, %c0_i32_0 : i32, i32, i32
  }
  func.func @transform_1(%arg0: i32) -> (i32, i32) {
    %c0_i32 = arith.constant 0 : i32
    %c0_i32_0 = arith.constant 0 : i32
    %c0_i32_1 = arith.constant 0 : i32
    return %c0_i32, %c0_i32_0 : i32, i32
  }
  func.func @transform_2(%arg0: i32) -> (i32, i32) {
    %c0_i32 = arith.constant 0 : i32
    %c0_i32_0 = arith.constant 0 : i32
    %c0_i32_1 = arith.constant 0 : i32
    return %c0_i32, %c0_i32_0 : i32, i32
  }
  func.func @transform_3(%arg0: i32) -> (i32, i32) {
    %c0_i32 = arith.constant 0 : i32
    %c0_i32_0 = arith.constant 0 : i32
    %c0_i32_1 = arith.constant 0 : i32
    return %c0_i32, %c0_i32_0 : i32, i32
  }
  func.func @transform_4(%arg0: i32) -> (i32, i32) {
    %c0_i32 = arith.constant 0 : i32
    %c0_i32_0 = arith.constant 0 : i32
    %c0_i32_1 = arith.constant 0 : i32
    return %c0_i32, %c0_i32_0 : i32, i32
  }
  func.func @transform_5(%arg0: i32) -> (i32, i32) {
    %c0_i32 = arith.constant 0 : i32
    %c0_i32_0 = arith.constant 0 : i32
    %c0_i32_1 = arith.constant 0 : i32
    return %c0_i32, %c0_i32_0 : i32, i32
  }
  func.func @transform_6(%arg0: i32) -> (i32, i32) {
    %c0_i32 = arith.constant 0 : i32
    %c0_i32_0 = arith.constant 0 : i32
    %c0_i32_1 = arith.constant 0 : i32
    return %c0_i32, %c0_i32_0 : i32, i32
  }
  func.func @transform_7(%arg0: i32) -> (i32, i32) {
    %c0_i32 = arith.constant 0 : i32
    %c0_i32_0 = arith.constant 0 : i32
    %c0_i32_1 = arith.constant 0 : i32
    return %c0_i32, %c0_i32_0 : i32, i32
  }
  func.func @transform_8(%arg0: i32) -> (i32, i32) {
    %c0_i32 = arith.constant 0 : i32
    %c0_i32_0 = arith.constant 0 : i32
    %c0_i32_1 = arith.constant 0 : i32
    return %c0_i32, %c0_i32_0 : i32, i32
  }
  func.func @transform_9(%arg0: i32) -> (i32, i32) {
    %c0_i32 = arith.constant 0 : i32
    %c0_i32_0 = arith.constant 0 : i32
    %c0_i32_1 = arith.constant 0 : i32
    return %c0_i32, %c0_i32_0 : i32, i32
  }
  func.func @transform_10(%arg0: i32) -> (i32, i32) {
    %c0_i32 = arith.constant 0 : i32
    %c0_i32_0 = arith.constant 0 : i32
    %c0_i32_1 = arith.constant 0 : i32
    return %c0_i32, %c0_i32_0 : i32, i32
  }
  func.func @transform_11(%arg0: i32) -> (i32, i32) {
    %c0_i32 = arith.constant 0 : i32
    %c0_i32_0 = arith.constant 0 : i32
    %c0_i32_1 = arith.constant 0 : i32
    return %c0_i32, %c0_i32_0 : i32, i32
  }
  func.func @transform_12(%arg0: i32) -> (i32, i32) {
    %c0_i32 = arith.constant 0 : i32
    %c0_i32_0 = arith.constant 0 : i32
    %c0_i32_1 = arith.constant 0 : i32
    return %c0_i32, %c0_i32_0 : i32, i32
  }
  func.func @transform_13(%arg0: i32) -> (i32, i32) {
    %c0_i32 = arith.constant 0 : i32
    %c0_i32_0 = arith.constant 0 : i32
    %c0_i32_1 = arith.constant 0 : i32
    return %c0_i32, %c0_i32_0 : i32, i32
  }
  func.func @transform_14(%arg0: i32) -> (i32, i32) {
    %c0_i32 = arith.constant 0 : i32
    %c0_i32_0 = arith.constant 0 : i32
    %c0_i32_1 = arith.constant 0 : i32
    return %c0_i32, %c0_i32_0 : i32, i32
  }
  func.func @transform_15(%arg0: i32) -> (i32, i32, i32) {
    %c0_i32 = arith.constant 0 : i32
    %c0_i32_0 = arith.constant 0 : i32
    %c0_i32_1 = arith.constant 0 : i32
    return %arg0, %c0_i32, %c0_i32_0 : i32, i32, i32
  }
}

</mosaic_0001>

<bundles_post_ra>
// kernel: tpu_custom_call.1
= control target key start
LH: loop header
LB: loop body
LE: loop exit
PB: predicated region body
PF: predicated region fallthrough
CT: control target
= control target key end

     0   :  { %20 = vsyncpa [#allocation3], 0  ;;  %s1411_s0 = inlined_call_operand.vmem [shape: f32[2,8,32], index: 0, kind: input, shape index: {}]   ;;  %s1412_s1 = inlined_call_operand.hbm [shape: bf16[32,64], index: 1, kind: input, shape index: {}]   ;;  %s1413_s2 = inlined_call_operand.vmem [shape: f32[1,64], index: 2, kind: input, shape index: {}]   ;;  %s1414_s3 = inlined_call_operand.vmem [shape: bf16[64,64], index: 3, kind: input, shape index: {}]   ;;  %s1415_s4 = inlined_call_operand.hbm [shape: f32[1,64], index: 4, kind: input, shape index: {}]   ;;  %s1416_s5 = inlined_call_operand.vmem [shape: bf16[64,32], index: 5, kind: input, shape index: {}]   ;;  %s1417_s6 = inlined_call_operand.vmem [shape: f32[1,32], index: 6, kind: input, shape index: {}]   ;;  %s1418_s7 = inlined_call_operand.vmem [shape: bf16[32,192], index: 7, kind: input, shape index: {}]   ;;  %s1419_s8 = inlined_call_operand.vmem [shape: f32[1,192], index: 8, kind: input, shape index: {}]   ;;  %s1420_s9 = inlined_call_operand.hbm [shape: bf16[32,64], index: 9, kind: input, shape index: {}]   ;;  %s1421_s10 = inlined_call_operand.vmem [shape: f32[1,64], index: 10, kind: input, shape index: {}]   ;;  %s1422_s11 = inlined_call_operand.hbm [shape: bf16[64,64], index: 11, kind: input, shape index: {}]   ;;  %s1423_s12 = inlined_call_operand.vmem [shape: f32[1,64], index: 12, kind: input, shape index: {}]   ;;  %s1424_s13 = inlined_call_operand.vmem [shape: bf16[64,32], index: 13, kind: input, shape index: {}]   ;;  %s1425_s14 = inlined_call_operand.vmem [shape: f32[1,32], index: 14, kind: input, shape index: {}]   ;;  %s1426_s15 = inlined_call_operand.hbm [shape: f32[1,1,128], index: 15, kind: output, shape index: {}]  }
   0x1   :  { %21 = vsyncpa [#allocation6], 0 }
   0x2   :  { %22 = vsyncpa [#allocation9], 0  ;;  %s48_s20 = sshll.u32 %s1415_s4, 4  ;;  %s49_s20 = int_to_ptr.hbm [resolvable:$true] %s48_s20 }
   0x3   :  { %23 = vsyncpa [#allocation4], 0  ;;  %s1148_s21 = smov [#allocation5]   ;;  %s30_s25 = sshll.u32 %s1412_s1, 4  ;;  %s31_s25 = int_to_ptr.hbm [resolvable:$true] %s30_s25 }
   0x4   :  { %s50_s22 = sshll.u32 %s1148_s21, 4  ;;  %s1149_s26 = smov [#allocation2]   ;;  %s51_s22 = int_to_ptr.vmem [resolvable:$true] %s50_s22 }
   0x5   :  { %53 = dma.hbm_to_vmem [thread:$0]  %s49_s20, 16, %s51_s22, [#allocation6]  }
   0x6   :  { %s32_s27 = sshll.u32 %s1149_s26, 4  ;;  %s1150_s28 = smov 64   ;;  %s33_s27 = int_to_ptr.vmem [resolvable:$true] %s32_s27 }
   0x7   :  { %s1151_s29 = smov 4   ;;  %s66_s16 = sshll.u32 %s1420_s9, 4  ;;  %s67_s16 = int_to_ptr.hbm [resolvable:$true] %s66_s16 }
   0x8   :  { %38 = dma.hbm_to_vmem [thread:$0]  %s31_s25, 256, %s33_s27, [#allocation3], %s1150_s28, %s1150_s28, %s1151_s29  }
   0x9   :  { %s1152_s17 = smov [#allocation7]   ;;  %s81_s20 = sshll.u32 %s1422_s11, 4  ;;  %s82_s20 = int_to_ptr.hbm [resolvable:$true] %s81_s20 }
   0xa   :  { %s68_s18 = sshll.u32 %s1152_s17, 4  ;;  %s1153_s21 = smov [#allocation8]   ;;  %s69_s18 = int_to_ptr.vmem [resolvable:$true] %s68_s18 }
   0xb   :  { %74 = dma.hbm_to_vmem [thread:$0]  %s67_s16, 256, %s69_s18, [#allocation6], %s1150_s28, %s1150_s28, %s1151_s29  }
   0xc   :  { %s83_s22 = sshll.u32 %s1153_s21, 4  ;;  %s84_s22 = int_to_ptr.vmem [resolvable:$true] %s83_s22 }
   0xd   :  { %89 = dma.hbm_to_vmem [thread:$0]  %s82_s20, 512, %s84_s22, [#allocation9], %s1150_s28, %s1150_s28, %s1151_s29  }
   0xe   :  { %1140 = dma.done.wait [#allocation3], 256  }
   0xf   :  { %1141 = vsyncadd [#allocation3], 4294967040 }
  0x10   :  { %1142 = dma.done.wait [#allocation6], 272  }
  0x11   :  { %1143 = vsyncadd [#allocation6], 4294967024 }
  0x12   :  { %1144 = dma.done.wait [#allocation9], 512  }
  0x13   :  { %1145 = vsyncadd [#allocation9], 4294966784  ;;  %v961_v0 = vld [vmem:[#allocation2 + $0x8] sm:$0xff]  ;;  %v960_v1 = vld [vmem:[#allocation2] sm:$0xff]  ;;  %vm136_vm0 = vcmask 261120   ;;  %vm195_vm1 = vcmask 523264  }
  0x14   :  { %v1258_v2 = vld [vmem:[%s1411_s0] sm:$0xff]  ;;  %v1263_v3 = vld [vmem:[%s1411_s0 + $0x8] sm:$0xff]  ;;  %146 = vmatpush.bf16.msra.mxu0 %v961_v0  ;;  %v965_v5 = vld [vmem:[%s1414_s3 + $0x18] sm:$0xff]  ;;  %vm509_vm2 = vcmask 1043456   ;;  %vm453_vm3 = vcmask 64512   ;;  %vm794_vm4 = vcmask 1041409  }
  0x15   :  { %v115_v4 = vpack.c.bf16 %v1263_v3, %v1258_v2  ;;  %203 = vmatpush.bf16.msra.mxu1 %v965_v5  ;;  %v964_v6 = vld [vmem:[%s1414_s3 + $0x10] sm:$0xff]  ;;  %v963_v7 = vld [vmem:[%s1414_s3 + $0x8] sm:$0xff]  ;;  %v962_v8 = vld [vmem:[%s1414_s3] sm:$0xff]  ;;  %s831_s4 = sshll.u32 %s1426_s15, 4  ;;  %vm821_vm5 = vcmask 15360   ;;  %s832_s4 = int_to_ptr.hbm [resolvable:$true] %s831_s4 }
  0x16   :  { %v998_v10 = vld [vmem:[%s1413_s2] ss:$0 sm:$0xff]  ;;  %v969_v19 = vld [vmem:[%s1416_s5 + $0x18] sm:$0xff]  ;;  %v968_v20 = vld [vmem:[%s1416_s5 + $0x10] sm:$0xff] }
  0x17   :  { %261 = vmatpush.bf16.msra.mxu2 %v969_v19  ;;  %v967_v21 = vld [vmem:[%s1416_s5 + $0x8] sm:$0xff]  ;;  %v966_v22 = vld [vmem:[%s1416_s5] sm:$0xff]  ;;  %v999_v24 = vld [vmem:[#allocation5] ss:$0 sm:$0xff] }
  0x18   :  { %147 = vmatpush.bf16.msra.mxu0 %v960_v1  ;;  %v896_v33 = vld [vmem:[%s1418_s7 + $0x10] sm:$0xf]  ;;  %v973_v34 = vld [vmem:[%s1418_s7 + $0x14] sm:$0xf0]  ;;  %v972_v35 = vld [vmem:[%s1418_s7 + $0x14] sm:$0xf] }
  0x19   :  { %204 = vmatpush.bf16.msra.mxu1 %v964_v6  ;;  %v897_v36 = vor.u32 %v973_v34, %v896_v33  ;;  %v898_v37 = vld [vmem:[%s1418_s7 + $0x18] sm:$0xf0]  ;;  %v888_v39 = vld [vmem:[%s1418_s7] sm:$0xf]  ;;  %v971_v40 = vld [vmem:[%s1418_s7 + $0x4] sm:$0xf0] }
  0x1a   :  { %v901_v38 = vor.u32 %v972_v35, %v898_v37  ;;  %v970_v41 = vld [vmem:[%s1418_s7 + $0x4] sm:$0xf]  ;;  %v889_v42 = vor.u32 %v971_v40, %v888_v39  ;;  %v890_v43 = vld [vmem:[%s1418_s7 + $0x8] sm:$0xf0]  ;;  %v1000_v46 = vld [vmem:[%s1417_s6] ss:$0 sm:$0xff] }
  0x1b   :  { %851 = vmatmul.msk.bf16.vlgmr.msra.gmra.mxu0 %vm136_vm0, %v115_v4  ;;  %262 = vmatpush.bf16.msra.mxu2 %v968_v20  ;;  %v893_v44 = vor.u32 %v970_v41, %v890_v43  ;;  %v276_v52 = vld [vmem:[%s1419_s8] sm:$0x3]  ;;  %s1154_s6 = smov 96  }
  0x1c   :  { %311 = vmatpush.bf16.msra.mxu3 %v897_v36  ;;  %325 = vmatpush.bf16.msrb.mxu0 %v901_v38  ;;  %v278_v53 = vperm.slane %v276_v52, 0  ;;  %v279_v54 = vperm.slane %v276_v52, 1 }
  0x1d   :  { %205 = vmatpush.bf16.msra.mxu1 %v963_v7 }
  0x1f   :  { %263 = vmatpush.bf16.msra.mxu2 %v967_v21 }
  0x20   :  { %312 = vmatpush.bf16.msra.mxu3 %v889_v42  ;;  %326 = vmatpush.bf16.msrb.mxu0 %v893_v44 }
  0x21   :  { %206 = vmatpush.bf16.msra.mxu1 %v962_v8 }
  0x23   :  { %264 = vmatpush.bf16.msra.mxu2 %v966_v22 }
  0x98   :  { %v149_v9 = vpop.f32.mrf.mxu0 }
  0x99   :  { %v150_v11 = vadd.f32 %v998_v10, %v149_v9 }
  0x9b   :  { %v154_v13 = vmul.f32 0.2, %v150_v11 }
  0x9d   :  { %v156_v16 = vmax.f32 %v150_v11, %v154_v13 }
  0xa0   :  { %v151_v12 = vpop.f32.mrf.mxu0 }
  0xa1   :  { %v152_v14 = vadd.f32 %v998_v10, %v151_v12 }
  0xa3   :  { %v155_v15 = vmul.f32 0.2, %v152_v14 }
  0xa5   :  { %v157_v17 = vmax.f32 %v152_v14, %v155_v15 }
  0xa7   :  { %v158_v18 = vpack.c.bf16 %v157_v17, %v156_v16 }
  0xa9   :  { %868 = vmatmul.msk.bf16.vlgmr.msra.gmra.mxu1 %vm195_vm1, %v158_v18 }
 0x126   :  { %v208_v23 = vpop.f32.mrf.mxu1 }
 0x127   :  { %v209_v25 = vadd.f32 %v999_v24, %v208_v23 }
 0x129   :  { %v213_v27 = vmul.f32 0.2, %v209_v25 }
 0x12b   :  { %v215_v30 = vmax.f32 %v209_v25, %v213_v27 }
 0x12e   :  { %v210_v26 = vpop.f32.mrf.mxu1 }
 0x12f   :  { %v211_v28 = vadd.f32 %v999_v24, %v210_v26 }
 0x131   :  { %v214_v29 = vmul.f32 0.2, %v211_v28 }
 0x133   :  { %v216_v31 = vmax.f32 %v211_v28, %v214_v29 }
 0x135   :  { %v217_v32 = vpack.c.bf16 %v216_v31, %v215_v30 }
 0x137   :  { %885 = vmatmul.msk.bf16.vlgmr.msra.gmra.mxu2 %vm195_vm1, %v217_v32 }
 0x1ba   :  { %v266_v45 = vpop.f32.mrf.mxu2 }
 0x1bb   :  { %v267_v48 = vadd.f32 %v1000_v46, %v266_v45 }
 0x1c2   :  { %v268_v47 = vpop.f32.mrf.mxu2 }
 0x1c3   :  { %v269_v49 = vadd.f32 %v1000_v46, %v268_v47 }
 0x1c5   :  { %v271_v50 = vpack.c.bf16 %v269_v49, %v267_v48 }
 0x1c7   :  { %902 = vmatmul.msk.bf16.vlgmr.msra.gmra.mxu3 %vm136_vm0, %v271_v50  ;;  %903 = vmatmul.msk.bf16.vlgmr.msrb.gmra.mxu0 %vm136_vm0, %v271_v50 }
 0x244   :  { %v328_v51 = vpop.f32.mrf.mxu0 }
 0x245   :  { %v1329_v58 = vadd.f32 %v328_v51, %v279_v54 }
 0x247   :  { %v502_v10 = vpack.c.bf16 %v1329_v58, %v1329_v58 }
 0x249   :  { %v511_v15 = vsel %vm509_vm2, %v502_v10, 0 }
 0x24a   :  { %v314_v55 = vpop.f32.mrf.mxu3 }
 0x24b   :  { %v315_v56 = vadd.f32 %v314_v55, %v278_v53 }
 0x24c   :  { %v330_v57 = vpop.f32.mrf.mxu0 }
 0x24d   :  { %v1331_v59 = vadd.f32 %v330_v57, %v279_v54  ;;  %335 = vrot.lane.b32.xlu0 %v315_v56, %s1154_s6  ;;  %v349_v60 = vpack.c.bf16 %v315_v56, %v315_v56 }
 0x24f   :  { %v993_v61 = vpack.i.bf16 %v1331_v59, %v1329_v58  ;;  %v354_v62 = vunpack.c.l.b16 %v349_v60  ;;  %v503_v18 = vpack.c.bf16 %v1331_v59, %v1331_v59 }
 0x251   :  { %v355_v63 = vpack.c.b16 %v354_v62, %v354_v62  ;;  %v530_v22 = vsel %vm509_vm2, %v503_v18, 0 }
 0x252   :  { %v316_v0 = vpop.f32.mrf.mxu3 }
 0x253   :  { %v317_v1 = vadd.f32 %v316_v0, %v278_v53  ;;  %356 = vrot.lane.b32.xlu1 %v355_v63, %s1150_s28 }
 0x255   :  { %v350_v4 = vpack.c.bf16 %v317_v1, %v317_v1  ;;  %337 = vrot.lane.b32.xlu0 %v317_v1, %s1154_s6 }
 0x257   :  { %v378_v5 = vunpack.c.l.b16 %v350_v4 }
 0x259   :  { %v379_v6 = vpack.c.b16 %v378_v5, %v378_v5 }
 0x25b   :  { %380 = vrot.lane.b32.xlu1 %v379_v6, %s1150_s28 }
 0x2bf   :  { %v336_v7 = vpop.permute.xlu0 %335 }
 0x2c0   :  { %v351_v8 = vpack.c.bf16 %v336_v7, %v336_v7 }
 0x2c2   :  { %v402_v9 = vunpack.c.l.b16 %v351_v8 }
 0x2c4   :  { %v403_v11 = vpack.c.b16 %v402_v9, %v402_v9 }
 0x2c5   :  { %v357_v12 = vpop.permute.xlu1 %356 }
 0x2c6   :  { %404 = vrot.lane.b32.xlu2 %v403_v11, %s1150_s28  ;;  %v362_v13 = vsel %vm136_vm0, %v357_v12, 0 }
 0x2c7   :  { %v338_v14 = vpop.permute.xlu0 %337  ;;  %371 = vmatpush.bf16.xpose.msrb.mxu3 %v362_v13 }
 0x2c8   :  { %v352_v16 = vpack.c.bf16 %v338_v14, %v338_v14 }
 0x2ca   :  { %v426_v17 = vunpack.c.l.b16 %v352_v16 }
 0x2cc   :  { %v427_v19 = vpack.c.b16 %v426_v17, %v426_v17 }
 0x2cd   :  { %v381_v20 = vpop.permute.xlu1 %380 }
 0x2ce   :  { %428 = vrot.lane.b32.xlu2 %v427_v19, %s1150_s28  ;;  %904 = vmatmul.msk.bf16.vlgmr.msrb.gmra.mxu3 %vm136_vm0, %v349_v60  ;;  %v386_v21 = vsel %vm136_vm0, %v381_v20, 0 }
 0x2cf   :  { %520 = vmatpush.bf16.msra.mxu3 %v511_v15  ;;  %395 = vmatpush.bf16.xpose.msrb.mxu1 %v386_v21  ;;  %v975_v21 = vld [vmem:[#allocation7 + $0x8] sm:$0xff] }
 0x2d3   :  { %617 = vmatpush.bf16.msrb.mxu3 %v975_v21 }
 0x2d6   :  { %905 = vmatmul.msk.bf16.vlgmr.msrb.gmra.mxu1 %vm136_vm0, %v350_v4 }
 0x2d7   :  { %539 = vmatpush.bf16.msra.mxu1 %v530_v22 }
 0x320   :  { %v405_v23 = vpop.permute.xlu2 %404 }
 0x321   :  { %v410_v24 = vsel %vm136_vm0, %v405_v23, 0 }
 0x322   :  { %419 = vmatpush.bf16.xpose.msrb.mxu2 %v410_v24 }
 0x328   :  { %v429_v25 = vpop.permute.xlu2 %428 }
 0x329   :  { %v434_v26 = vsel %vm136_vm0, %v429_v25, 0  ;;  %906 = vmatmul.msk.bf16.vlgmr.msrb.gmra.mxu2 %vm136_vm0, %v351_v8  ;;  %v974_v25 = vld [vmem:[#allocation7] sm:$0xff] }
 0x32a   :  { %443 = vmatpush.bf16.xpose.msra.mxu0 %v434_v26  ;;  %618 = vmatpush.bf16.msrb.mxu3 %v974_v25 }
 0x331   :  { %907 = vmatmul.msk.bf16.vlgmr.msra.gmra.mxu0 %vm136_vm0, %v352_v16 }
 0x351   :  { %v373_v27 = vpop.f32.mrf.mxu3 }
 0x352   :  { %v449_v28 = vmul.f32 0.17677669, %v373_v27 }
 0x353   :  { %v397_v29 = vpop.f32.mrf.mxu1 }
 0x354   :  { %v450_v30 = vmul.f32 0.17677669, %v397_v29  ;;  %v454_v31 = vsel %vm453_vm3, %v449_v28, -inf }
 0x355   :  { %455 = vmax.xlane.f32.xlu0 %v454_v31 }
 0x356   :  { %v457_v32 = vsel %vm453_vm3, %v450_v30, -inf }
 0x357   :  { %458 = vmax.xlane.f32.xlu1 %v457_v32 }
 0x359   :  { %v375_v33 = vpop.f32.mrf.mxu3 }
 0x35b   :  { %v399_v34 = vpop.f32.mrf.mxu1 }
 0x3ac   :  { %v421_v35 = vpop.f32.mrf.mxu2 }
 0x3ad   :  { %v451_v36 = vmul.f32 0.17677669, %v421_v35 }
 0x3ae   :  { %v445_v37 = vpop.f32.mrf.mxu0 }
 0x3af   :  { %v460_v38 = vsel %vm453_vm3, %v451_v36, -inf  ;;  %v452_v39 = vmul.f32 0.17677669, %v445_v37  ;;  %v978_v37 = vld [vmem:[#allocation8 + $0x10] sm:$0xff] }
 0x3b0   :  { %461 = vmax.xlane.f32.xlu2 %v460_v38  ;;  %v977_v38 = vld [vmem:[#allocation8 + $0x8] sm:$0xff] }
 0x3b1   :  { %v463_v42 = vsel %vm453_vm3, %v452_v39, -inf }
 0x3b4   :  { %v423_v40 = vpop.f32.mrf.mxu2 }
 0x3b6   :  { %v447_v41 = vpop.f32.mrf.mxu0 }
 0x3b7   :  { %v1001_v41 = vld [vmem:[%s1421_s10] ss:$0 sm:$0xff] }
 0x3b8   :  { %464 = vmax.xlane.f32.xlu2 %v463_v42 }
 0x3c8   :  { %v456_v43 = vpop.xlane.xlu0 %455 }
 0x3c9   :  { %v466_v44 = vsub.f32 %v449_v28, %v456_v43 }
 0x3ca   :  { %v459_v45 = vpop.xlane.xlu1 %458 }
 0x3cb   :  { %v470_v46 = vmul.f32 1.442695, %v466_v44  ;;  %v467_v47 = vsub.f32 %v450_v30, %v459_v45 }
 0x3cd   :  { %1004 = vpow2.f32 %v470_v46  ;;  %v472_v48 = vmul.f32 1.442695, %v467_v47 }
 0x3cf   :  { %1006 = vpow2.f32 %v472_v48 }
 0x3d3   :  { %v1005_v49 = vpop.eup %1004 }
 0x3d4   :  { %v478_v50 = vsel %vm453_vm3, %v1005_v49, 0.0 }
 0x3d5   :  { %v1007_v51 = vpop.eup %1006  ;;  %479 = vadd.xlane.f32.xlu0 %v478_v50 }
 0x3d6   :  { %v481_v52 = vsel %vm453_vm3, %v1007_v51, 0.0 }
 0x3d7   :  { %482 = vadd.xlane.f32.xlu1 %v481_v52 }
 0x3e9   :  { %994 = vrot.lane.b32.xlu0 %v993_v61, %s1154_s6 }
 0x423   :  { %v462_v53 = vpop.xlane.xlu2 %461 }
 0x424   :  { %v468_v54 = vsub.f32 %v451_v36, %v462_v53  ;;  %v979_v36 = vld [vmem:[#allocation8 + $0x18] sm:$0xff] }
 0x425   :  { %686 = vmatpush.bf16.msrb.mxu1 %v979_v36 }
 0x426   :  { %v474_v55 = vmul.f32 1.442695, %v468_v54 }
 0x428   :  { %1008 = vpow2.f32 %v474_v55 }
 0x429   :  { %687 = vmatpush.bf16.msrb.mxu1 %v978_v37 }
 0x42b   :  { %v465_v56 = vpop.xlane.xlu2 %464 }
 0x42c   :  { %v469_v57 = vsub.f32 %v452_v39, %v465_v56  ;;  %v976_v39 = vld [vmem:[#allocation8] sm:$0xff] }
 0x42d   :  { %688 = vmatpush.bf16.msrb.mxu1 %v977_v38 }
 0x42e   :  { %v1009_v60 = vpop.eup %1008  ;;  %v476_v62 = vmul.f32 1.442695, %v469_v57 }
 0x42f   :  { %v484_v63 = vsel %vm453_vm3, %v1009_v60, 0.0 }
 0x430   :  { %1010 = vpow2.f32 %v476_v62  ;;  %485 = vadd.xlane.f32.xlu2 %v484_v63  ;;  %v983_v62 = vld [vmem:[%s1424_s13 + $0x18] sm:$0xff]  ;;  %v982_v63 = vld [vmem:[%s1424_s13 + $0x10] sm:$0xff] }
 0x431   :  { %689 = vmatpush.bf16.msrb.mxu1 %v976_v39 }
 0x436   :  { %v1011_v0 = vpop.eup %1010 }
 0x437   :  { %v487_v1 = vsel %vm453_vm3, %v1011_v0, 0.0 }
 0x438   :  { %488 = vadd.xlane.f32.xlu1 %v487_v1  ;;  %v980_v1 = vld [vmem:[%s1424_s13] sm:$0xff] }
 0x448   :  { %v480_v4 = vpop.xlane.xlu0 %479 }
 0x449   :  { %1012 = vrcp.f32 %v480_v4 }
 0x44a   :  { %v483_v58 = vpop.xlane.xlu1 %482 }
 0x44b   :  { %1014 = vrcp.f32 %v483_v58  ;;  %v1002_v58 = vld [vmem:[%s1423_s12] ss:$0 sm:$0xff] }
 0x44f   :  { %v1013_v59 = vpop.eup %1012 }
 0x450   :  { %v494_v61 = vmul.f32 %v1013_v59, %v1005_v49 }
 0x451   :  { %v1015_v5 = vpop.eup %1014 }
 0x452   :  { %v498_v6 = vpack.c.bf16 %v494_v61, %v494_v61  ;;  %v495_v7 = vmul.f32 %v1015_v5, %v1007_v51 }
 0x454   :  { %v499_v8 = vpack.c.bf16 %v495_v7, %v495_v7  ;;  %908 = vmatmul.msk.bf16.vlgmr.msra.gmra.mxu3 %vm453_vm3, %v498_v6 }
 0x456   :  { %909 = vmatmul.msk.bf16.vlgmr.msra.gmra.mxu1 %vm453_vm3, %v499_v8 }
 0x45b   :  { %v995_v9 = vpop.permute.xlu0 %994 }
 0x45c   :  { %v997_v10 = vunpack.i.h.bf16 %v995_v9  ;;  %v996_v11 = vunpack.i.l.bf16 %v995_v9 }
 0x45e   :  { %v505_v12 = vpack.c.bf16 %v997_v10, %v997_v10  ;;  %v504_v13 = vpack.c.bf16 %v996_v11, %v996_v11 }
 0x460   :  { %v568_v14 = vsel %vm509_vm2, %v505_v12, 0  ;;  %v549_v15 = vsel %vm509_vm2, %v504_v13, 0 }
 0x461   :  { %558 = vmatpush.bf16.msra.mxu2 %v549_v15  ;;  %577 = vmatpush.bf16.msrb.mxu0 %v568_v14 }
 0x465   :  { %757 = vmatpush.bf16.msrb.mxu2 %v983_v62 }
 0x469   :  { %758 = vmatpush.bf16.msrb.mxu2 %v982_v63 }
 0x4a3   :  { %v486_v16 = vpop.xlane.xlu2 %485 }
 0x4a4   :  { %1016 = vrcp.f32 %v486_v16 }
 0x4aa   :  { %v1017_v17 = vpop.eup %1016 }
 0x4ab   :  { %v496_v18 = vmul.f32 %v1017_v17, %v1009_v60  ;;  %v489_v19 = vpop.xlane.xlu1 %488 }
 0x4ac   :  { %1018 = vrcp.f32 %v489_v19 }
 0x4ad   :  { %v500_v20 = vpack.c.bf16 %v496_v18, %v496_v18 }
 0x4af   :  { %910 = vmatmul.msk.bf16.vlgmr.msra.gmra.mxu2 %vm453_vm3, %v500_v20 }
 0x4b2   :  { %v1019_v22 = vpop.eup %1018 }
 0x4b3   :  { %v497_v23 = vmul.f32 %v1019_v22, %v1011_v0  ;;  %v981_v0 = vld [vmem:[%s1424_s13 + $0x8] sm:$0xff]  ;;  %v1003_v22 = vld [vmem:[%s1425_s14] ss:$0 sm:$0xff]  ;;  %s1156_s14 = smov [#allocation10]  }
 0x4b4   :  { %759 = vmatpush.bf16.msrb.mxu2 %v981_v0  ;;  %s829_s27 = sshll.u32 %s1156_s14, 4  ;;  %s830_s27 = int_to_ptr.vmem [resolvable:$true] %s829_s27 }
 0x4b5   :  { %v501_v24 = vpack.c.bf16 %v497_v23, %v497_v23 }
 0x4b7   :  { %911 = vmatmul.msk.bf16.vlgmr.msrb.gmra.mxu0 %vm453_vm3, %v501_v24 }
 0x4b8   :  { %760 = vmatpush.bf16.msrb.mxu2 %v980_v1 }
 0x4d3   :  { %v541_v26 = vpop.f32.mrf.mxu1 }
 0x4d7   :  { %v522_v27 = vpop.f32.mrf.mxu3 }
 0x4d8   :  { %v583_v28 = vpack.c.bf16 %v541_v26, %v522_v27 }
 0x4da   :  { %920 = vmatmul.msk.bf16.vlgmr.msrb.gmra.mxu3 %vm136_vm0, %v583_v28 }
 0x4db   :  { %v543_v29 = vpop.f32.mrf.mxu1 }
 0x4df   :  { %v524_v30 = vpop.f32.mrf.mxu3 }
 0x532   :  { %v560_v31 = vpop.f32.mrf.mxu2 }
 0x534   :  { %v579_v32 = vpop.f32.mrf.mxu0 }
 0x535   :  { %v584_v33 = vpack.c.bf16 %v579_v32, %v560_v31 }
 0x537   :  { %921 = vmatmul.msk.bf16.gmra.mxu3 %vm136_vm0, %v584_v33 }
 0x53a   :  { %v562_v34 = vpop.f32.mrf.mxu2 }
 0x53c   :  { %v581_v35 = vpop.f32.mrf.mxu0 }
 0x55d   :  { %v620_v40 = vpop.f32.mrf.mxu3 }
 0x55e   :  { %v621_v42 = vadd.f32 %v1001_v41, %v620_v40 }
 0x560   :  { %v630_v44 = vmul.f32 0.2, %v621_v42 }
 0x562   :  { %v634_v47 = vmax.f32 %v621_v42, %v630_v44 }
 0x565   :  { %v622_v43 = vpop.f32.mrf.mxu3 }
 0x566   :  { %v623_v45 = vadd.f32 %v1001_v41, %v622_v43 }
 0x568   :  { %v631_v46 = vmul.f32 0.2, %v623_v45 }
 0x56a   :  { %v635_v48 = vmax.f32 %v623_v45, %v631_v46 }
 0x56c   :  { %v638_v49 = vpack.c.bf16 %v635_v48, %v634_v47  ;;  %v1155_v47 = vmov 1.0  }
 0x56e   :  { %938 = vmatmul.msk.bf16.vlgmr.msrb.gmra.mxu1 %vm195_vm1, %v638_v49 }
 0x5ba   :  { %v625_v50 = vpop.f32.mrf.mxu3 }
 0x5bb   :  { %v626_v51 = vadd.f32 %v1001_v41, %v625_v50 }
 0x5bd   :  { %v632_v53 = vmul.f32 0.2, %v626_v51 }
 0x5bf   :  { %v636_v56 = vmax.f32 %v626_v51, %v632_v53 }
 0x5c2   :  { %v627_v52 = vpop.f32.mrf.mxu3 }
 0x5c3   :  { %v628_v54 = vadd.f32 %v1001_v41, %v627_v52 }
 0x5c5   :  { %v633_v55 = vmul.f32 0.2, %v628_v54 }
 0x5c7   :  { %v637_v57 = vmax.f32 %v628_v54, %v633_v55 }
 0x5c9   :  { %v639_v60 = vpack.c.bf16 %v637_v57, %v636_v56 }
 0x5cb   :  { %939 = vmatmul.msk.bf16.gmra.mxu1 %vm195_vm1, %v639_v60 }
 0x5eb   :  { %v691_v4 = vpop.f32.mrf.mxu1 }
 0x5ec   :  { %v692_v59 = vadd.f32 %v1002_v58, %v691_v4 }
 0x5ee   :  { %v701_v5 = vmul.f32 0.2, %v692_v59 }
 0x5f0   :  { %v705_v8 = vmax.f32 %v692_v59, %v701_v5 }
 0x5f3   :  { %v693_v61 = vpop.f32.mrf.mxu1 }
 0x5f4   :  { %v694_v6 = vadd.f32 %v1002_v58, %v693_v61 }
 0x5f6   :  { %v702_v7 = vmul.f32 0.2, %v694_v6 }
 0x5f8   :  { %v706_v9 = vmax.f32 %v694_v6, %v702_v7 }
 0x5fa   :  { %v709_v10 = vpack.c.bf16 %v706_v9, %v705_v8 }
 0x5fc   :  { %956 = vmatmul.msk.bf16.vlgmr.msrb.gmra.mxu2 %vm195_vm1, %v709_v10 }
 0x648   :  { %v696_v11 = vpop.f32.mrf.mxu1 }
 0x649   :  { %v697_v12 = vadd.f32 %v1002_v58, %v696_v11 }
 0x64b   :  { %v703_v14 = vmul.f32 0.2, %v697_v12 }
 0x64d   :  { %v707_v17 = vmax.f32 %v697_v12, %v703_v14 }
 0x650   :  { %v698_v13 = vpop.f32.mrf.mxu1 }
 0x651   :  { %v699_v15 = vadd.f32 %v1002_v58, %v698_v13 }
 0x653   :  { %v704_v16 = vmul.f32 0.2, %v699_v15 }
 0x655   :  { %v708_v18 = vmax.f32 %v699_v15, %v704_v16 }
 0x657   :  { %v710_v19 = vpack.c.bf16 %v708_v18, %v707_v17 }
 0x659   :  { %957 = vmatmul.msk.bf16.gmra.mxu2 %vm195_vm1, %v710_v19 }
 0x67f   :  { %v762_v20 = vpop.f32.mrf.mxu2 }
 0x680   :  { %v763_v23 = vadd.f32 %v1003_v22, %v762_v20 }
 0x682   :  { %v772_v25 = vsub.f32 %v1258_v2, %v763_v23 }
 0x684   :  { %v774_v28 = vmul.f32 %v772_v25, %v772_v25 }
 0x687   :  { %v764_v21 = vpop.f32.mrf.mxu2 }
 0x688   :  { %v765_v29 = vadd.f32 %v1003_v22, %v764_v21 }
 0x68a   :  { %v773_v33 = vsub.f32 %v1263_v3, %v765_v29 }
 0x68c   :  { %v775_v37 = vmul.f32 %v773_v33, %v773_v33 }
 0x6dc   :  { %v767_v24 = vpop.f32.mrf.mxu2 }
 0x6dd   :  { %v768_v26 = vadd.f32 %v1003_v22, %v767_v24 }
 0x6df   :  { %v776_v27 = vsub.f32 %v1258_v2, %v768_v26  ;;  %v790_v2 = vlaneseq }
 0x6e1   :  { %v778_v30 = vmul.f32 %v776_v27, %v776_v27  ;;  %v791_v41 = vand.u32 127, %v790_v2 }
 0x6e3   :  { %v780_v31 = vadd.f32 %v778_v30, %v774_v28 }
 0x6e4   :  { %v769_v32 = vpop.f32.mrf.mxu2 }
 0x6e5   :  { %v770_v34 = vadd.f32 %v1003_v22, %v769_v32  ;;  %v782_v35 = vsel %vm136_vm0, %v780_v31, 0.0 }
 0x6e6   :  { %783 = vadd.xlane.f32.xlu2 %v782_v35 }
 0x6e7   :  { %v777_v36 = vsub.f32 %v1263_v3, %v770_v34 }
 0x6e9   :  { %v779_v38 = vmul.f32 %v777_v36, %v777_v36 }
 0x6eb   :  { %v781_v39 = vadd.f32 %v779_v38, %v775_v37 }
 0x6ed   :  { %v785_v40 = vsel %vm136_vm0, %v781_v39, 0.0 }
 0x6ee   :  { %786 = vadd.xlane.f32.xlu1 %v785_v40 }
 0x759   :  { %v784_v42 = vpop.xlane.xlu2 %783 }
 0x75a   :  { %v792_v44 = vperm.slane %v784_v42, %v791_v41 }
 0x761   :  { %v787_v43 = vpop.xlane.xlu1 %786 }
 0x762   :  { %v793_v45 = vperm.slane %v787_v43, %v791_v41 }
 0x764   :  { %v795_v46 = vsel %vm794_vm4, %v793_v45, %v792_v44 }
 0x765   :  { %958 = vmatpush.xpose.msk.msra.mxu0 %vm453_vm3, %v795_v46 }
 0x768   :  { %959 = vmatmul.msk.f32.vlgmr.msra.gmra.mxu0 %vm453_vm3, %v1155_v47 }
 0x7e5   :  { %v818_v3 = vpop.f32.mrf.mxu0 }
 0x7e6   :  { %v822_v48 = vsel %vm821_vm5, %v818_v3, 0.0 }
 0x7e7   :  { %823 = vst [vmem:[#allocation10] sm:$0x1] %v822_v48 }
 0x7e8   :  { %834 = dma.vmem_to_hbm [thread:$0]  %s830_s27, 16, %s832_s4, [#allocation4]  }
 0x7e9   :  { %1146 = dma.done.wait [#allocation4], 16  }
 0x7ea   :  { %1147 = vsyncadd [#allocation4], 4294967280 }
 0x7eb   :  { %839 = vsyncpa [#allocation3], 1 }
 0x7ec   :  { %840 = vsyncpa [#allocation6], 1 }
 0x7ed   :  { %841 = vsyncpa [#allocation9], 1 }
 0x7ee   :  { %842 = vsyncpa [#allocation4], 1 }

</bundles_post_ra>
